<compile_context>
chip_gen: v7x
topology: tpu7x:2x2x1
jax: 0.10.0
libtpu: 0.0.40
codegen_flags: <defaults>
</compile_context>

<pallas_src>
import functools

import jax
import jax.numpy as jnp
from jax.experimental import pallas as pl
from jax.experimental.pallas import tpu as pltpu

NUM_INPUTS = 2          # MountainCar-v0 observation_space.shape[0]
H1, H2, H3 = 64, 128, 64
LANES = 128             # lane width of the packed parameter slab

# Parameter-slab row layout (all rows are 128 lanes, zero padded):
#   row 0          : w1[0, :]                (cols 0:64)
#   row 1          : w1[1, :]                (cols 0:64)
#   row 2          : b1                      (cols 0:64)
#   row 3          : b2                      (cols 0:128)
#   row 4          : b3                      (cols 0:64)
#   row 5          : wc^T (critic weight)    (cols 0:64)
#   row 6          : bc at lane 0
#   row 7          : unused (zeros)
#   rows 8:136     : w2 padded to [128, 128] (rows 64:128 zero)
#   rows 136:264   : w3 padded to [128, 128] (cols 64:128 zero)
SMALL_ROWS = 8
W2_ROW0 = SMALL_ROWS            # 8
W3_ROW0 = SMALL_ROWS + 128      # 136
SLAB_ROWS = W3_ROW0 + 128       # 264

SMALL_BATCH_MAX = 512           # <= this -> ungridded whole-array path


def _actor_critic_kernel(x_ref, p_ref, value_ref, feat_ref):
    x = x_ref[...]                                   # [TB, 2]

    w1r0 = p_ref[0:1, :]                             # [1, 128]
    w1r1 = p_ref[1:2, :]
    b1 = p_ref[2:3, :]
    b2 = p_ref[3:4, :]
    b3 = p_ref[4:5, :]
    wc = p_ref[5:6, :]                               # critic weights (cols 64: are 0)
    bc = p_ref[6:7, 0:1]                             # [1, 1] critic bias
    w2 = p_ref[W2_ROW0:W2_ROW0 + 128, :]             # [128, 128]
    w3 = p_ref[W3_ROW0:W3_ROW0 + 128, :]             # [128, 128]

    # Layer 1 (K = 2): two VPU broadcast MACs, no MXU round trip.
    # Padding lanes 64:128 stay exactly zero (weights & bias padded with 0).
    h1 = jnp.maximum(x[:, 0:1] * w1r0 + x[:, 1:2] * w1r1 + b1, 0.0)     # [TB, 128]

    # Layers 2 & 3 on the MXU with f32 accumulation.
    # (Optional v5e speedup: cast h1/h2/w2/w3 to bf16 here if ~1e-2 tolerance
    #  vs the PyTorch reference is acceptable; kept f32 for exactness.)
    h2 = jnp.maximum(
        jnp.dot(h1, w2, preferred_element_type=jnp.float32) + b2, 0.0)  # [TB, 128]
    h3 = jnp.maximum(
        jnp.dot(h2, w3, preferred_element_type=jnp.float32) + b3, 0.0)  # [TB, 128], lanes 64: are 0

    # Critic head (N = 1): VPU multiply + lane (XLU) reduction instead of an
    # M x 1 MXU matmul. Full-lane reduce is exact because wc pads are 0.
    value_ref[...] = jnp.sum(h3 * wc, axis=-1, keepdims=True) + bc      # [TB, 1]

    # Features are the first 64 lanes of h3 (lanes 64:128 are exactly 0).
    feat_ref[...] = h3[:, :H3]                                          # [TB, 64]


def pack_params(params):
    """Pack the 8 parameter arrays into one [264, 128] f32 slab (single DMA)."""
    w1, b1, w2, b2, w3, b3, wc, bc = params
    slab = jnp.zeros((SLAB_ROWS, LANES), jnp.float32)
    slab = slab.at[0, :H1].set(w1[0])
    slab = slab.at[1, :H1].set(w1[1])
    slab = slab.at[2, :H1].set(b1[0])
    slab = slab.at[3, :H2].set(b2[0])
    slab = slab.at[4, :H3].set(b3[0])
    slab = slab.at[5, :H3].set(wc[:, 0])
    slab = slab.at[6, 0].set(bc[0, 0])
    slab = slab.at[W2_ROW0:W2_ROW0 + H1, :].set(w2)        # rows 8:72 (rest stay 0)
    slab = slab.at[W3_ROW0:W3_ROW0 + H2, :H3].set(w3)      # rows 136:264, cols 0:64
    return slab


def _round_up(n, m):
    return ((n + m - 1) // m) * m


@functools.partial(jax.jit, static_argnames=("batch_tile",))
def actor_critic_forward(x, param_slab, *, batch_tile=1024):
    """Returns (value [B,1], features [B,64]) == ActorCritic.forward."""
    B = x.shape[0]
    out_shape = (jax.ShapeDtypeStruct((B, 1), jnp.float32),
                 jax.ShapeDtypeStruct((B, H3), jnp.float32))

    if B <= SMALL_BATCH_MAX:
        # Small-batch path: no grid, whole-array VMEM refs, zero pipeline overhead.
        vmem = pl.BlockSpec(memory_space=pltpu.MemorySpace.VMEM)
        value, feat = pl.pallas_call(
            _actor_critic_kernel,
            out_shape=out_shape,
            in_specs=[vmem, vmem],
            out_specs=(vmem, vmem),
        )(x, param_slab)
        return value, feat

    # Batch-tiled path. Pick the tile so the grid has >= 2 steps (so the
    # "parallel" axis shards across v7x's two TensorCores) but never bigger
    # than batch_tile (keeps per-step VMEM bounded). cdiv grid + masked final
    # block handles non-divisible B without any wrapper-side padding/slicing.
    tile = min(max(_round_up(batch_tile, 8), 8), _round_up(pl.cdiv(B, 2), 256))
    grid = (pl.cdiv(B, tile),)

    value, feat = pl.pallas_call(
        _actor_critic_kernel,
        out_shape=out_shape,
        grid=grid,
        in_specs=[
            pl.BlockSpec((tile, NUM_INPUTS), lambda i: (i, 0)),
            # Constant block index -> the weight slab stays resident in VMEM.
            pl.BlockSpec((SLAB_ROWS, LANES), lambda i: (0, 0)),
        ],
        out_specs=(
            pl.BlockSpec((tile, 1), lambda i: (i, 0)),
            pl.BlockSpec((tile, H3), lambda i: (i, 0)),
        ),
        compiler_params=pltpu.CompilerParams(
            dimension_semantics=("parallel",)),
    )(x, param_slab)
    return value, feat


def _xavier_uniform(key, fan_in, fan_out):
    # nn.init.xavier_uniform_ : U(-a, a), a = sqrt(6 / (fan_in + fan_out))
    limit = jnp.sqrt(6.0 / (fan_in + fan_out))
    return jax.random.uniform(key, (fan_in, fan_out), jnp.float32, -limit, limit)


def _bias_uniform(key, fan_in, fan_out):
    # PyTorch nn.Linear default bias init: U(-1/sqrt(fan_in), 1/sqrt(fan_in))
    bound = 1.0 / jnp.sqrt(jnp.float32(fan_in))
    return jax.random.uniform(key, (1, fan_out), jnp.float32, -bound, bound)


def init_params(key):
    keys = jax.random.split(key, 8)
    w1 = _xavier_uniform(keys[0], NUM_INPUTS, H1)
    b1 = _bias_uniform(keys[1], NUM_INPUTS, H1)
    w2 = _xavier_uniform(keys[2], H1, H2)
    b2 = _bias_uniform(keys[3], H1, H2)
    w3 = _xavier_uniform(keys[4], H2, H3)
    b3 = _bias_uniform(keys[5], H2, H3)
    wc = _xavier_uniform(keys[6], H3, 1)
    bc = _bias_uniform(keys[7], H3, 1)
    # TODO(synk): actor_head exists in __init__ but is unused by forward(); omitted.
    return (w1, b1, w2, b2, w3, b3, wc, bc)


def _reference_forward(x, params):
    w1, b1, w2, b2, w3, b3, wc, bc = params
    h = jnp.maximum(x @ w1 + b1, 0.0)
    h = jnp.maximum(h @ w2 + b2, 0.0)
    h = jnp.maximum(h @ w3 + b3, 0.0)
    return h @ wc + bc, h


if __name__ == "__main__":
    key = jax.random.PRNGKey(0)
    pkey, xkey = jax.random.split(key)

    params = init_params(pkey)
    slab = pack_params(params)

    # Small batch of MountainCar states -> ungridded whole-array path.
    B = 8
    x = jax.random.normal(xkey, (B, NUM_INPUTS), dtype=jnp.float32)
    value, feat = actor_critic_forward(x, slab)
    jax.block_until_ready((value, feat))

    ref_value, ref_feat = _reference_forward(x, params)
    assert value.shape == (B, 1) and feat.shape == (B, H3)
    assert jnp.allclose(value, ref_value, atol=1e-5, rtol=1e-5)
    assert jnp.allclose(feat, ref_feat, atol=1e-5, rtol=1e-5)

    # Larger batches -> tiled path: 1536 gives a clean 2-step parallel grid
    # (both TensorCores on v7x); 1000 exercises the masked partial last block.
    for Bb in (1536, 1000):
        xb = jax.random.normal(jax.random.PRNGKey(Bb), (Bb, NUM_INPUTS),
                               dtype=jnp.float32)
        vb, fb = actor_critic_forward(xb, slab)
        jax.block_until_ready((vb, fb))
        rvb, rfb = _reference_forward(xb, params)
        assert vb.shape == (Bb, 1) and fb.shape == (Bb, H3)
        assert jnp.allclose(vb, rvb, atol=1e-5, rtol=1e-5)
        assert jnp.allclose(fb, rfb, atol=1e-5, rtol=1e-5)

    print("KERNEL_OK")
</pallas_src>

<mosaic_0001>
module attributes {stable_mosaic.version = 11 : i64} {
  func.func @_actor_critic_kernel(%arg0: memref<8x2xf32, #tpu.memory_space<vmem>>, %arg1: memref<264x128xf32, #tpu.memory_space<vmem>>, %arg2: memref<8x1xf32, #tpu.memory_space<vmem>>, %arg3: memref<8x64xf32, #tpu.memory_space<vmem>>) attributes {dimension_semantics = [], scalar_prefetch = 0 : i64, scratch_operands = 0 : i64, tpu.core_type = #tpu.core_type<tc>} {
    %c0 = arith.constant 0 : index
    %c0_0 = arith.constant 0 : index
    %0 = vector.load %arg0[%c0, %c0_0] : memref<8x2xf32, #tpu.memory_space<vmem>>, vector<8x2xf32>
    %c0_1 = arith.constant 0 : index
    %c0_2 = arith.constant 0 : index
    %1 = vector.load %arg1[%c0_1, %c0_2] : memref<264x128xf32, #tpu.memory_space<vmem>>, vector<1x128xf32>
    %c1 = arith.constant 1 : index
    %c0_3 = arith.constant 0 : index
    %2 = vector.load %arg1[%c1, %c0_3] : memref<264x128xf32, #tpu.memory_space<vmem>>, vector<1x128xf32>
    %c2 = arith.constant 2 : index
    %c0_4 = arith.constant 0 : index
    %3 = vector.load %arg1[%c2, %c0_4] : memref<264x128xf32, #tpu.memory_space<vmem>>, vector<1x128xf32>
    %c3 = arith.constant 3 : index
    %c0_5 = arith.constant 0 : index
    %4 = vector.load %arg1[%c3, %c0_5] : memref<264x128xf32, #tpu.memory_space<vmem>>, vector<1x128xf32>
    %c4 = arith.constant 4 : index
    %c0_6 = arith.constant 0 : index
    %5 = vector.load %arg1[%c4, %c0_6] : memref<264x128xf32, #tpu.memory_space<vmem>>, vector<1x128xf32>
    %c5 = arith.constant 5 : index
    %c0_7 = arith.constant 0 : index
    %6 = vector.load %arg1[%c5, %c0_7] : memref<264x128xf32, #tpu.memory_space<vmem>>, vector<1x128xf32>
    %c6 = arith.constant 6 : index
    %c0_8 = arith.constant 0 : index
    %7 = vector.load %arg1[%c6, %c0_8] : memref<264x128xf32, #tpu.memory_space<vmem>>, vector<1x1xf32>
    %c8 = arith.constant 8 : index
    %c0_9 = arith.constant 0 : index
    %8 = vector.load %arg1[%c8, %c0_9] : memref<264x128xf32, #tpu.memory_space<vmem>>, vector<128x128xf32>
    %c136 = arith.constant 136 : index
    %c0_10 = arith.constant 0 : index
    %9 = vector.load %arg1[%c136, %c0_10] : memref<264x128xf32, #tpu.memory_space<vmem>>, vector<128x128xf32>
    %10 = vector.extract_strided_slice %0 {offsets = [0, 0], sizes = [8, 1], strides = [1, 1]} : vector<8x2xf32> to vector<8x1xf32>
    %11 = vector.broadcast %10 : vector<8x1xf32> to vector<8x128xf32>
    %12 = vector.broadcast %1 : vector<1x128xf32> to vector<8x128xf32>
    %13 = arith.mulf %11, %12 : vector<8x128xf32>
    %14 = vector.extract_strided_slice %0 {offsets = [0, 1], sizes = [8, 1], strides = [1, 1]} : vector<8x2xf32> to vector<8x1xf32>
    %15 = vector.broadcast %14 : vector<8x1xf32> to vector<8x128xf32>
    %16 = vector.broadcast %2 : vector<1x128xf32> to vector<8x128xf32>
    %17 = arith.mulf %15, %16 : vector<8x128xf32>
    %18 = arith.addf %13, %17 : vector<8x128xf32>
    %19 = vector.broadcast %3 : vector<1x128xf32> to vector<8x128xf32>
    %20 = arith.addf %18, %19 : vector<8x128xf32>
    %cst = arith.constant 0.000000e+00 : f32
    %21 = vector.broadcast %cst : f32 to vector<8x128xf32>
    %22 = arith.maximumf %20, %21 : vector<8x128xf32>
    %cst_11 = arith.constant dense<0.000000e+00> : vector<8x128xf32>
    %23 = tpu.matmul %22, %8, %cst_11 {dimension_numbers = #tpu.dot_dimension_numbers<[1], [0], [0], [1], [0, 0, 1, 1], [], []>} : vector<8x128xf32>, vector<128x128xf32>, vector<8x128xf32> -> vector<8x128xf32>
    %24 = vector.broadcast %4 : vector<1x128xf32> to vector<8x128xf32>
    %25 = arith.addf %23, %24 : vector<8x128xf32>
    %cst_12 = arith.constant 0.000000e+00 : f32
    %26 = vector.broadcast %cst_12 : f32 to vector<8x128xf32>
    %27 = arith.maximumf %25, %26 : vector<8x128xf32>
    %cst_13 = arith.constant dense<0.000000e+00> : vector<8x128xf32>
    %28 = tpu.matmul %27, %9, %cst_13 {dimension_numbers = #tpu.dot_dimension_numbers<[1], [0], [0], [1], [0, 0, 1, 1], [], []>} : vector<8x128xf32>, vector<128x128xf32>, vector<8x128xf32> -> vector<8x128xf32>
    %29 = vector.broadcast %5 : vector<1x128xf32> to vector<8x128xf32>
    %30 = arith.addf %28, %29 : vector<8x128xf32>
    %cst_14 = arith.constant 0.000000e+00 : f32
    %31 = vector.broadcast %cst_14 : f32 to vector<8x128xf32>
    %32 = arith.maximumf %30, %31 : vector<8x128xf32>
    %33 = vector.broadcast %6 : vector<1x128xf32> to vector<8x128xf32>
    %34 = arith.mulf %32, %33 : vector<8x128xf32>
    %cst_15 = arith.constant dense<0.000000e+00> : vector<8xf32>
    %35 = vector.multi_reduction <add>, %34, %cst_15 [1] : vector<8x128xf32> to vector<8xf32>
    %36 = vector.shape_cast %35 : vector<8xf32> to vector<8x1xf32>
    %37 = vector.broadcast %7 : vector<1x1xf32> to vector<8x1xf32>
    %38 = arith.addf %36, %37 : vector<8x1xf32>
    %c0_16 = arith.constant 0 : index
    %c0_17 = arith.constant 0 : index
    %39 = vector.load %arg2[%c0_16, %c0_17] : memref<8x1xf32, #tpu.memory_space<vmem>>, vector<8x1xf32>
    tpu.vector_store %arg2[%c0_16, %c0_17], %38 {strides = array<i32>} : memref<8x1xf32, #tpu.memory_space<vmem>>, vector<8x1xf32>,
    %40 = vector.extract_strided_slice %32 {offsets = [0, 0], sizes = [8, 64], strides = [1, 1]} : vector<8x128xf32> to vector<8x64xf32>
    %c0_18 = arith.constant 0 : index
    %c0_19 = arith.constant 0 : index
    %41 = vector.load %arg3[%c0_18, %c0_19] : memref<8x64xf32, #tpu.memory_space<vmem>>, vector<8x64xf32>
    tpu.vector_store %arg3[%c0_18, %c0_19], %40 {strides = array<i32>} : memref<8x64xf32, #tpu.memory_space<vmem>>, vector<8x64xf32>,
    return
  }
}

</mosaic_0001>

<bundles_post_ra>
// kernel: actor_critic_forward.1
= control target key start
LH: loop header
LB: loop body
LE: loop exit
PB: predicated region body
PF: predicated region fallthrough
CT: control target
= control target key end

     0   :  { %9 = vsyncpa [#allocation3], 0  ;;  %s572_s0 = inlined_call_operand.vmem [shape: f32[8,2], index: 0, kind: input, shape index: {}]   ;;  %s573_s1 = inlined_call_operand.hbm [shape: f32[264,128], index: 1, kind: input, shape index: {}]   ;;  %s574_s2 = inlined_call_operand.vmem [shape: f32[8,1], index: 2, kind: output, shape index: {0}]   ;;  %s575_s3 = inlined_call_operand.hbm [shape: f32[8,64], index: 3, kind: output, shape index: {1}]  }
   0x1   :  { %10 = vsyncpa [#allocation4], 0  ;;  %s497_s12 = smov [#allocation2]   ;;  %s449_s16 = scalar_lea.hbm %s573_s1, 4224 }
   0x2   :  { %s18_s13 = sshll.u32 %s497_s12, 4  ;;  %p450_p0 = scmp.ne.s32.totalorder %s573_s1, %s449_s16  ;;  %s19_s13 = int_to_ptr.vmem [resolvable:$true] %s18_s13 }
   0x3   :  { %p453_p1 = scmp.lt.u32.totalorder %s449_s16, %s573_s1 }
   0x5   :  { %p455_p2 = pnand %p453_p1, %p450_p0 }
   0x7   :  { %458 = shalt.err (!%p455_p2)
}
   0x8   :  { %s459_s21 = scalar_lea.vmem %s19_s13, 4224  ;;  %p464_p4 = scmp.lt.s32.totalorder %s19_s13, %s19_s13 }
   0x9   :  { %p460_p3 = scmp.ne.s32.totalorder %s19_s13, %s459_s21  ;;  %p465_p5 = scmp.lt.s32.totalorder %s459_s21, %s459_s21 }
   0xb   :  { %p466_p6 = por %p465_p5, %p464_p4 }
   0xd   :  { %p467_p7 = pnand %p466_p6, %p460_p3 }
   0xf   :  { %470 = shalt.err (!%p467_p7)
}
  0x10   :  { %s498_s22 = smov 128   ;;  %s499_s23 = smov 8  }
  0x11   :  { %24 = dma.hbm_to_vmem [thread:$0]  %s573_s1, 4224, %s19_s13, [#allocation3], %s498_s22, %s498_s22, %s499_s23  }
  0x12   :  { %493 = dma.done.wait [#allocation3], 4224  }
  0x13   :  { %494 = vsyncadd [#allocation3], 4294963072  ;;  %v500_v0 = vmov 0   ;;  %v501_v1 = vmov 0.0|0.0   ;;  %v28_v2 = vld [vmem:[%s572_s0] sm:$0xff]  ;;  %v36_v3 = vld [vmem:[#allocation2 + $0x8] sm:$0xff] }
  0x14   :  { %447 = vset.pattern.permute.xlu0 %v500_v0  ;;  %390 = vmatprep.subr.bf16.mxu0 %v501_v1  ;;  %v37_v4 = vld [vmem:[#allocation2 + $0x10] sm:$0xff]  ;;  %v38_v6 = vld [vmem:[#allocation2 + $0x18] sm:$0xff]  ;;  %v39_v7 = vld [vmem:[#allocation2 + $0x20] sm:$0xff]  ;;  %v502_v11 = vmov 1   ;;  %vm503_vm0 = vmmov 0   ;;  %v504_v15 = vmov 0.0  }
  0x15   :  { %414 = vmatprep.subr.bf16.mxu1 %v501_v1  ;;  %70 = vperm.xlu0 %447, %v28_v2   ;;  %v391_v5 = vpack.c.bf16 %v37_v4, %v36_v3  ;;  %v394_v8 = vpack.c.bf16 %v39_v7, %v38_v6  ;;  %v40_v9 = vld [vmem:[#allocation2 + $0x28] sm:$0xff]  ;;  %v41_v10 = vld [vmem:[#allocation2 + $0x30] sm:$0xff]  ;;  %v42_v13 = vld [vmem:[#allocation2 + $0x38] sm:$0xff]  ;;  %vm258_vm1 = vcmask 523264   ;;  %s505_s0 = smov [#allocation5]  }
  0x16   :  { %v397_v12 = vpack.c.bf16 %v41_v10, %v40_v9  ;;  %v43_v14 = vld [vmem:[#allocation2 + $0x40] sm:$0xff]  ;;  %352 = vmatprep.mubr.msk.f32.mxu0 %vm503_vm0, %v504_v15  ;;  %387 = vmatprep.mubr.msk.f32.mxu1 %vm503_vm0, %v504_v15  ;;  %v44_v17 = vld [vmem:[#allocation2 + $0x48] sm:$0xff]  ;;  %v45_v18 = vld [vmem:[#allocation2 + $0x50] sm:$0xff]  ;;  %s268_s1 = sshll.u32 %s505_s0, 4  ;;  %s269_s1 = int_to_ptr.vmem [resolvable:$true] %s268_s1 }
  0x17   :  { %392 = vmatpush3.bf16.msra.mxu0 %v391_v5  ;;  %v400_v16 = vpack.c.bf16 %v43_v14, %v42_v13  ;;  %v52_v19 = vld [vmem:[#allocation2 + $0x88] sm:$0xff]  ;;  %v53_v20 = vld [vmem:[#allocation2 + $0x90] sm:$0xff]  ;;  %v54_v21 = vld [vmem:[#allocation2 + $0x98] sm:$0xff]  ;;  %v403_v22 = vpack.c.bf16 %v45_v18, %v44_v17  ;;  %s471_s28 = scalar_lea.vmem %s269_s1, 128  ;;  %p476_p9 = scmp.lt.s32.totalorder %s269_s1, %s269_s1 }
  0x18   :  { %393 = vmatprep.subr.bf16.mxu0 %v501_v1  ;;  %v415_v23 = vpack.c.bf16 %v53_v20, %v52_v19  ;;  %v55_v24 = vld [vmem:[#allocation2 + $0xa0] sm:$0xff]  ;;  %v46_v25 = vld [vmem:[#allocation2 + $0x58] sm:$0xff]  ;;  %v56_v28 = vld [vmem:[#allocation2 + $0xa8] sm:$0xff]  ;;  %p472_p8 = scmp.ne.s32.totalorder %s269_s1, %s471_s28  ;;  %p477_p10 = scmp.lt.s32.totalorder %s471_s28, %s471_s28 }
  0x19   :  { %448 = vset.pattern.permute.xlu0 %v502_v11  ;;  %v47_v26 = vld [vmem:[#allocation2 + $0x60] sm:$0xff]  ;;  %v418_v27 = vpack.c.bf16 %v55_v24, %v54_v21  ;;  %v57_v29 = vld [vmem:[#allocation2 + $0xb0] sm:$0xff]  ;;  %v48_v31 = vld [vmem:[#allocation2 + $0x68] sm:$0xff] }
  0x1a   :  { %79 = vperm.xlu0 %448, %v28_v2   ;;  %416 = vmatpush3.bf16.msra.mxu1 %v415_v23  ;;  %v406_v30 = vpack.c.bf16 %v47_v26, %v46_v25  ;;  %v49_v32 = vld [vmem:[#allocation2 + $0x70] sm:$0xff]  ;;  %v421_v33 = vpack.c.bf16 %v57_v29, %v56_v28  ;;  %v58_v34 = vld [vmem:[#allocation2 + $0xb8] sm:$0xff]  ;;  %v59_v35 = vld [vmem:[#allocation2 + $0xc0] sm:$0xff]  ;;  %p478_p11 = por %p477_p10, %p476_p9 }
  0x1b   :  { %395 = vmatpush3.bf16.msra.mxu0 %v394_v8  ;;  %417 = vmatprep.subr.bf16.mxu1 %v501_v1  ;;  %v409_v36 = vpack.c.bf16 %v49_v32, %v48_v31  ;;  %v50_v37 = vld [vmem:[#allocation2 + $0x78] sm:$0xff]  ;;  %v51_v38 = vld [vmem:[#allocation2 + $0x80] sm:$0xff]  ;;  %v424_v39 = vpack.c.bf16 %v59_v35, %v58_v34  ;;  %v60_v40 = vld [vmem:[#allocation2 + $0xc8] sm:$0xff] }
  0x1c   :  { %396 = vmatprep.subr.bf16.mxu0 %v501_v1  ;;  %v61_v41 = vld [vmem:[#allocation2 + $0xd0] sm:$0xff]  ;;  %v412_v42 = vpack.c.bf16 %v51_v38, %v50_v37  ;;  %v62_v44 = vld [vmem:[#allocation2 + $0xd8] sm:$0xff]  ;;  %v63_v45 = vld [vmem:[#allocation2 + $0xe0] sm:$0xff]  ;;  %p479_p12 = pnand %p478_p11, %p472_p8 }
  0x1d   :  { %v427_v43 = vpack.c.bf16 %v61_v41, %v60_v40  ;;  %v430_v46 = vpack.c.bf16 %v63_v45, %v62_v44  ;;  %v64_v47 = vld [vmem:[#allocation2 + $0xe8] sm:$0xff]  ;;  %v65_v48 = vld [vmem:[#allocation2 + $0xf0] sm:$0xff]  ;;  %v279_v51 = vld [vmem:[#allocation2] ss:$0 sm:$0xff] }
  0x1e   :  { %419 = vmatpush3.bf16.msra.mxu1 %v418_v27  ;;  %v433_v49 = vpack.c.bf16 %v65_v48, %v64_v47  ;;  %v280_v52 = vld [vmem:[#allocation2 + $0x1] ss:$0 sm:$0xff]  ;;  %v281_v56 = vld [vmem:[#allocation2 + $0x2] ss:$0 sm:$0xff]  ;;  %v66_v60 = vld [vmem:[#allocation2 + $0xf8] sm:$0xff] }
  0x1f   :  { %398 = vmatpush3.bf16.msra.mxu0 %v397_v12  ;;  %420 = vmatprep.subr.bf16.mxu1 %v501_v1  ;;  %v67_v61 = vld [vmem:[#allocation2 + $0x100] sm:$0xff] }
  0x20   :  { %399 = vmatprep.subr.bf16.mxu0 %v501_v1  ;;  %v436_v62 = vpack.c.bf16 %v67_v61, %v66_v60  ;;  %v282_v63 = vld [vmem:[#allocation2 + $0x3] ss:$0 sm:$0xff]  ;;  %v283_v4 = vld [vmem:[#allocation2 + $0x4] ss:$0 sm:$0xff]  ;;  %v284_v8 = vld [vmem:[#allocation2 + $0x5] ss:$0 sm:$0xff] }
  0x22   :  { %422 = vmatpush3.bf16.msra.mxu1 %v421_v33 }
  0x23   :  { %401 = vmatpush3.bf16.msra.mxu0 %v400_v16  ;;  %423 = vmatprep.subr.bf16.mxu1 %v501_v1 }
  0x24   :  { %402 = vmatprep.subr.bf16.mxu0 %v501_v1 }
  0x26   :  { %425 = vmatpush3.bf16.msra.mxu1 %v424_v39 }
  0x27   :  { %404 = vmatpush3.bf16.msra.mxu0 %v403_v22  ;;  %426 = vmatprep.subr.bf16.mxu1 %v501_v1 }
  0x28   :  { %405 = vmatprep.subr.bf16.mxu0 %v501_v1 }
  0x2a   :  { %428 = vmatpush3.bf16.msra.mxu1 %v427_v43 }
  0x2b   :  { %407 = vmatpush3.bf16.msra.mxu0 %v406_v30  ;;  %429 = vmatprep.subr.bf16.mxu1 %v501_v1 }
  0x2c   :  { %408 = vmatprep.subr.bf16.mxu0 %v501_v1 }
  0x2e   :  { %431 = vmatpush3.bf16.msra.mxu1 %v430_v46 }
  0x2f   :  { %410 = vmatpush3.bf16.msra.mxu0 %v409_v36  ;;  %432 = vmatprep.subr.bf16.mxu1 %v501_v1 }
  0x30   :  { %411 = vmatprep.subr.bf16.mxu0 %v501_v1 }
  0x32   :  { %434 = vmatpush3.bf16.msra.mxu1 %v433_v49 }
  0x33   :  { %413 = vmatpush3.bf16.msra.mxu0 %v412_v42  ;;  %435 = vmatprep.subr.bf16.mxu1 %v501_v1 }
  0x36   :  { %437 = vmatpush3.bf16.msra.mxu1 %v436_v62 }
  0x94   :  { %v71_v50 = vpop.permute.xlu0 %70 }
  0x95   :  { %v77_v54 = vmul.f32 %v279_v51, %v71_v50 }
  0x99   :  { %v80_v53 = vpop.permute.xlu0 %79 }
  0x9a   :  { %v86_v55 = vmul.f32 %v280_v52, %v80_v53 }
  0x9c   :  { %v87_v57 = vadd.f32 %v86_v55, %v77_v54 }
  0x9e   :  { %v92_v58 = vadd.f32 %v281_v56, %v87_v57 }
  0xa0   :  { %v93_v59 = vmax.f32 %v92_v58, 0.0 }
  0xa2   :  { %353 = vmatmul.mubr.f32.vlgmr.msra.gmra.mrb[0].mxu0 %v93_v59 }
 0x175   :  { %v164_v0 = vpop.f32.mrb[0].mxu0 }
 0x176   :  { %v165_v2 = vadd.f32 %v282_v63, %v164_v0  ;;  %v354_v3 = vpop.f32.mrb[1].mxu0 }
 0x178   :  { %v168_v1 = vmax.f32 %v165_v2, 0.0 }
 0x17a   :  { %388 = vmatmul.mubr.f32.vlgmr.msra.gmra.mrb[0].mxu1 %v168_v1 }
 0x24d   :  { %v239_v5 = vpop.f32.mrb[0].mxu1 }
 0x24e   :  { %v240_v6 = vadd.f32 %v283_v4, %v239_v5  ;;  %v389_v7 = vpop.f32.mrb[1].mxu1 }
 0x250   :  { %v243_v9 = vmax.f32 %v240_v6, 0.0 }
 0x252   :  { %v248_v10 = vmul.f32 %v284_v8, %v243_v9  ;;  %259 = vst.msk [vmem:[#allocation5] sm:$0xff] %vm258_vm1, %v243_v9 }
 0x254   :  { %249 = vadd.xlane.f32.xlu1 %v248_v10 }
 0x255   :  { %482 = shalt.err (!%p479_p12)
}
 0x256   :  { %s483_s4 = scalar_lea.hbm %s575_s3, 128 }
 0x257   :  { %p484_p13 = scmp.ne.s32.totalorder %s575_s3, %s483_s4  ;;  %p487_p0 = scmp.lt.u32.totalorder %s483_s4, %s575_s3 }
 0x259   :  { %p489_p1 = pnand %p487_p0, %p484_p13 }
 0x25b   :  { %492 = shalt.err (!%p489_p1)
}
 0x25c   :  { %271 = dma.vmem_to_hbm [thread:$0]  %s269_s1, 128, %s575_s3, [#allocation4]   ;;  %v285_v11 = vld [vmem:[#allocation2 + $0x6] ss:$0 sm:$0xff]  ;;  %vm256_vm2 = vcmask 7168  }
 0x2e1   :  { %v250_v12 = vpop.xlane.xlu1 %249 }
 0x2e2   :  { %v255_v13 = vadd.f32 %v285_v11, %v250_v12 }
 0x2e4   :  { %257 = vst.msk [vmem:[%s574_s2] sm:$0xff] %vm256_vm2, %v255_v13 }
 0x2e5   :  { %495 = dma.done.wait [#allocation4], 128  }
 0x2e6   :  { %496 = vsyncadd [#allocation4], 4294967168 }
 0x2e7   :  { %277 = vsyncpa [#allocation3], 1 }
 0x2e8   :  { %278 = vsyncpa [#allocation4], 1 }

</bundles_post_ra>
